<compile_context>
chip_gen: v7x
topology: tpu7x:2x2x1
jax: 0.10.0
libtpu: 0.0.40
codegen_flags: <defaults>
</compile_context>

<pallas_src>
import functools

import jax
import jax.numpy as jnp
from jax.experimental import pallas as pl
from jax.experimental.pallas import tpu as pltpu

EPSILON = 0.001


def _round_up(x, m):
  return (x + m - 1) // m * m


# ----------------------------------------------------------------------------
# Pallas kernel: joint ResMLP + beta regression head + beta moment transform
# ----------------------------------------------------------------------------
def _make_classifier_kernel(h, o, bh):
  """Fused kernel factory; (h, o, bh) are baked in as static slice sizes."""
  f32 = jnp.float32
  bf16 = jnp.bfloat16

  def mm(a, w):
    # MXU path: bf16 operands, f32 accumulation.
    return jnp.dot(a.astype(bf16), w, preferred_element_type=f32)

  def kernel(x_ref, scores_ref, w_in_ref, w_hh_ref, w_head_ref, vec_ref, out_ref):
    # ---- unpack packed parameter refs with static slices (zero runtime cost) ----
    b_in = vec_ref[0:1, :h]
    ln1_g, ln1_b = vec_ref[1:2, :h], vec_ref[2:3, :h]
    b1a, b1b = vec_ref[3:4, :h], vec_ref[4:5, :h]
    ln2_g, ln2_b = vec_ref[5:6, :h], vec_ref[6:7, :h]
    b2a, b2b = vec_ref[7:8, :h], vec_ref[8:9, :h]
    b_out = vec_ref[9:10, :o]
    wb1_bind = vec_ref[10:11, :bh]     # beta-head row for sigmoid(binding_score)
    wb1_sns = vec_ref[11:12, :bh]      # beta-head row for sns_score
    bb1 = vec_ref[12:13, :bh]
    bb2 = vec_ref[13:14, :2]

    # ---- joint ResMLP: single K=5D input-projection dot ----
    hcur = mm(x_ref[...], w_in_ref[...]) + b_in          # (TB, H) f32

    def res_block(hcur, g, b, wa, ba, wb, bbias):
      # two-pass LayerNorm statistics (eps=1e-5, biased var, like nn.LayerNorm)
      mu = jnp.mean(hcur, axis=-1, keepdims=True)
      c = hcur - mu
      var = jnp.mean(c * c, axis=-1, keepdims=True)
      hn = c * jax.lax.rsqrt(var + 1e-5) * g + b
      z = jnp.maximum(mm(hn, wa) + ba, 0.0)
      z = mm(z, wb) + bbias
      return hcur + z

    hcur = res_block(hcur, ln1_g, ln1_b, w_hh_ref[0], b1a, w_hh_ref[1], b1b)
    hcur = res_block(hcur, ln2_g, ln2_b, w_hh_ref[2], b2a, w_hh_ref[3], b2b)
    mlp_out = mm(hcur, w_head_ref[0, :h, :o]) + b_out    # (TB, O) f32

    # ---- beta regression head ----
    # beta_regr_input = cat([sigmoid(binding_score), sns_score, mlp_out]);
    # the concat is folded into the first Linear: rows 0/1 of its weight are
    # applied as VPU broadcasts, rows 2: via the MXU dot.
    bscore = jax.nn.sigmoid(scores_ref[:, 0:1])          # (TB, 1)
    sns = scores_ref[:, 1:2]                             # (TB, 1)
    z = (bscore * wb1_bind + sns * wb1_sns
         + mm(mlp_out, w_head_ref[1, :o, :bh]) + bb1)
    z = jnp.maximum(z, 0.0)
    # wb2 columns are zero-padded to the packed width; slice the dot output.
    beta = jax.nn.sigmoid(mm(z, w_head_ref[2, :bh, :])[:, :2] + bb2)   # (TB, 2)

    # ---- beta moment transform ----
    eps = EPSILON
    bm = beta[:, 0:1]
    bv = beta[:, 1:2]
    beta_mean = eps + (1.0 - 2.0 * eps) * bm
    beta_var = eps + (1.0 - 2.0 * eps) * (bv / 3.0) * beta_mean * (1.0 - beta_mean)
    out_ref[...] = jnp.concatenate([beta_mean, beta_var], axis=1).astype(out_ref.dtype)

  return kernel


# ----------------------------------------------------------------------------
# Wrapper: batch grid, VMEM-resident packed weights, (B, 2) output
# ----------------------------------------------------------------------------
def classifier_head(x, scores, wp, dims):
  """x: (B, 5D) f32 concatenated embeddings; scores: (B, 2) [binding_logit, sns].
  Returns (B, 2) f32 [beta_mean, beta_var]."""
  d, h, o, bh = dims
  b, in_dim = x.shape

  # Fat batch tiles (per-grid-step overhead dominates at these model dims);
  # keep >= 2 grid steps for medium batches so v7x's two TensorCores both run.
  tb = min(512, _round_up(b, 8))
  b_pad = _round_up(b, tb)
  n_tiles = b_pad // tb
  if n_tiles == 1 and b >= 16:
    tb = _round_up((b + 1) // 2, 8)
    b_pad = 2 * tb
    n_tiles = 2

  def pad_rows(a):
    a = a.astype(jnp.float32)
    return a if a.shape[0] == b_pad else jnp.pad(a, ((0, b_pad - a.shape[0]), (0, 0)))

  x = pad_rows(x)
  scores = pad_rows(scores)

  w_in, w_hh, w_head, vec = wp["w_in"], wp["w_hh"], wp["w_head"], wp["vec"]

  # activations: tiled over the batch grid
  act_specs = [
      pl.BlockSpec((tb, in_dim), lambda i: (i, 0)),
      pl.BlockSpec((tb, 2), lambda i: (i, 0)),
  ]
  # packed weights: constant index_map -> fetched once, VMEM-resident.
  # TODO(synk): mark these pipeline_mode=pl.Buffered(1) if H ever scales to 1-2K
  # (only matters for v7x's 64 MiB VMEM; irrelevant at these sizes).
  weight_specs = [
      pl.BlockSpec(w_in.shape, lambda i: (0, 0)),
      pl.BlockSpec(w_hh.shape, lambda i: (0, 0, 0)),
      pl.BlockSpec(w_head.shape, lambda i: (0, 0, 0)),
      pl.BlockSpec(vec.shape, lambda i: (0, 0)),
  ]

  # VMEM budget from the actual footprint (double-buffered) + margin.
  act_bytes = tb * (in_dim + 2 + 2) * 4
  w_bytes = (w_in.size + w_hh.size + w_head.size) * 2 + vec.size * 4
  vmem_limit = _round_up(2 * act_bytes + 2 * w_bytes + 2 * 1024 * 1024, 1024 * 1024)
  vmem_limit = min(max(vmem_limit, 4 * 1024 * 1024), 64 * 1024 * 1024)

  flops = 2 * b_pad * (in_dim * h + 4 * h * h + h * o + o * bh + bh * w_head.shape[2])
  transcendentals = 8 * b_pad
  bytes_accessed = (x.size + scores.size) * 4 + w_bytes + b_pad * 2 * 4

  out_pad = pl.pallas_call(
      _make_classifier_kernel(h, o, bh),
      out_shape=jax.ShapeDtypeStruct((b_pad, 2), jnp.float32),
      grid_spec=pltpu.PrefetchScalarGridSpec(
          num_scalar_prefetch=0,
          grid=(n_tiles,),
          in_specs=act_specs + weight_specs,
          out_specs=pl.BlockSpec((tb, 2), lambda i: (i, 0)),
      ),
      compiler_params=pltpu.CompilerParams(
          dimension_semantics=("parallel",),        # shards grid across v7x's 2 TCs
          vmem_limit_bytes=int(vmem_limit),
      ),
      cost_estimate=pl.CostEstimate(
          flops=int(flops),
          transcendentals=int(transcendentals),
          bytes_accessed=int(bytes_accessed)),
  )(x, scores, w_in, w_hh, w_head, vec)
  return out_pad[:b]


# ----------------------------------------------------------------------------
# Parameter init + one-time packing (hoisted out of the per-call path)
# ----------------------------------------------------------------------------
def _kaiming(key, shape):
  fan_in = shape[0]
  return jax.random.normal(key, shape, jnp.float32) * jnp.sqrt(2.0 / fan_in)


def init_params(key, vocab, d, h, out_dim, beta_h):
  ks = jax.random.split(key, 24)
  p = {}
  # stand-in embedding tables (binding / sns / immunogenicity aa embedders)
  p["tab_bind"] = jax.random.normal(ks[0], (vocab, d), jnp.float32) * 0.1
  p["tab_sns"] = jax.random.normal(ks[1], (vocab, d), jnp.float32) * 0.1
  p["tab_imm"] = jax.random.normal(ks[2], (vocab, d), jnp.float32) * 0.1
  # TODO(synk): binding_model / sns_model / PeptideEmbedder are external
  # (transformer) modules not defined in the reference class; linear stand-ins.
  p["w_bind_p"] = _kaiming(ks[3], (d, d))
  p["w_bind_h"] = _kaiming(ks[4], (d, d))
  p["w_bind_score_p"] = _kaiming(ks[5], (d, 1))
  p["w_bind_score_h"] = _kaiming(ks[6], (d, 1))
  p["w_sns_emb"] = _kaiming(ks[7], (d, d))
  p["w_sns_score"] = _kaiming(ks[8], (d, 1))
  p["w_imm_proj"] = _kaiming(ks[9], (d, d))
  # joint ResMLP
  in_dim = 5 * d
  p["w_in"] = _kaiming(ks[10], (in_dim, h))
  p["b_in"] = jnp.zeros((h,), jnp.float32)
  p["ln1_g"] = jnp.ones((h,), jnp.float32)
  p["ln1_b"] = jnp.zeros((h,), jnp.float32)
  p["w1a"] = _kaiming(ks[11], (h, h))
  p["b1a"] = jnp.zeros((h,), jnp.float32)
  p["w1b"] = _kaiming(ks[12], (h, h))
  p["b1b"] = jnp.zeros((h,), jnp.float32)
  p["ln2_g"] = jnp.ones((h,), jnp.float32)
  p["ln2_b"] = jnp.zeros((h,), jnp.float32)
  p["w2a"] = _kaiming(ks[13], (h, h))
  p["b2a"] = jnp.zeros((h,), jnp.float32)
  p["w2b"] = _kaiming(ks[14], (h, h))
  p["b2b"] = jnp.zeros((h,), jnp.float32)
  p["w_out"] = _kaiming(ks[15], (h, out_dim))
  p["b_out"] = jnp.zeros((out_dim,), jnp.float32)
  # beta regression head: Linear(out_dim+2, beta_h) -> ReLU -> Linear(beta_h,2) -> Sigmoid
  p["wb1"] = _kaiming(ks[16], (out_dim + 2, beta_h))
  p["bb1"] = jax.random.normal(ks[17], (beta_h,), jnp.float32) * 0.01
  p["wb2"] = _kaiming(ks[18], (beta_h, 2))
  p["bb2"] = jax.random.normal(ks[19], (2,), jnp.float32) * 0.01
  return p


def prep_params(p):
  """One-time weight packing / bf16 casting (NOT repeated per forward call)."""
  d = p["tab_bind"].shape[1]
  h = p["w_in"].shape[1]
  o = p["w_out"].shape[1]
  bh = p["wb1"].shape[1]
  bf = jnp.bfloat16

  wp = {}
  wp["tab_bind"], wp["tab_sns"], wp["tab_imm"] = p["tab_bind"], p["tab_sns"], p["tab_imm"]
  # batch the five D x D stand-in projections into one stacked einsum weight;
  # pack the three score columns into a single (3D, 2) matrix.
  wp["proj_stack"] = jnp.stack([p["w_bind_p"], p["w_bind_h"], p["w_sns_emb"],
                                p["w_imm_proj"], p["w_imm_proj"]])
  w_score = jnp.zeros((3 * d, 2), jnp.float32)
  w_score = w_score.at[0:d, 0:1].set(p["w_bind_score_p"])
  w_score = w_score.at[d:2 * d, 0:1].set(p["w_bind_score_h"])
  w_score = w_score.at[2 * d:3 * d, 1:2].set(p["w_sns_score"])
  wp["w_score"] = w_score

  # fused-kernel bf16 matmul weights, packed into 3 refs.
  wp["w_in"] = p["w_in"].astype(bf)                                        # (5D, H)
  wp["w_hh"] = jnp.stack([p["w1a"], p["w1b"], p["w2a"], p["w2b"]]).astype(bf)

  hp = max(h, o, bh)
  cp = max(o, bh, 2)

  def pad2(w):
    return jnp.pad(w, ((0, hp - w.shape[0]), (0, cp - w.shape[1])))

  # wb1 rows 0/1 = [sigmoid(binding_score), sns_score]; rows 2: = mlp_output
  # (matches the reference concat order).
  wp["w_head"] = jnp.stack([pad2(p["w_out"]), pad2(p["wb1"][2:]),
                            pad2(p["wb2"])]).astype(bf)                    # (3, Hp, Cp)

  wv = max(h, o, bh, 2)

  def row(v):
    v = jnp.reshape(v, (-1,))
    return jnp.pad(v, (0, wv - v.shape[0]))

  wp["vec"] = jnp.stack([
      row(p["b_in"]), row(p["ln1_g"]), row(p["ln1_b"]), row(p["b1a"]), row(p["b1b"]),
      row(p["ln2_g"]), row(p["ln2_b"]), row(p["b2a"]), row(p["b2b"]),
      row(p["b_out"]),
      row(p["wb1"][0]), row(p["wb1"][1]),
      row(p["bb1"]), row(p["bb2"]),
  ]).astype(jnp.float32)                                                   # (14, wv)

  dims = (d, h, o, bh)
  return wp, dims


# ----------------------------------------------------------------------------
# Forward: frozen-model stand-ins (plain JAX, batched) + fused Pallas head
# ----------------------------------------------------------------------------
def _pool_embed(tokens, table):
  # mean-pooled token embedding: (B, L) int -> (B, D)
  return jnp.take(table, tokens, axis=0).mean(axis=1)


@functools.partial(jax.jit, static_argnames=("dims",))
def immunogenicity_classifier_forward(peptides, hlas, wp, dims):
  d = dims[0]
  pep_bind = _pool_embed(peptides, wp["tab_bind"])
  hla_bind = _pool_embed(hlas, wp["tab_bind"])
  sns_pool = _pool_embed(peptides, wp["tab_sns"])
  imm_pep = _pool_embed(peptides, wp["tab_imm"])
  imm_hla = _pool_embed(hlas, wp["tab_imm"])

  # five D x D projections in one einsum; reshape produces the (B, 5D) concat
  # in the reference order [bind_pep, bind_hla, sns_pep, imm_pep, imm_hla].
  pools = jnp.stack([pep_bind, hla_bind, sns_pool, imm_pep, imm_hla])      # (5,B,D)
  x = jnp.einsum("kbd,kde->bke", pools, wp["proj_stack"])
  x = x.reshape(x.shape[0], 5 * d)
  # binding_logit and sns_score in one packed (B, 2) dot.
  scores = jnp.concatenate([pep_bind, hla_bind, sns_pool], axis=1) @ wp["w_score"]

  # fused Pallas kernel: joint ResMLP + beta head + moment transform
  return classifier_head(x, scores, wp, dims)


if __name__ == "__main__":
  B, LP, LH = 8, 9, 16          # batch, peptide length, HLA pseudo-seq length
  VOCAB, D = 24, 32             # amino-acid vocab, embedding dim
  HID, OUT_DIM, BETA_H = 64, 32, 32

  key = jax.random.PRNGKey(0)
  k_pep, k_hla, k_par = jax.random.split(key, 3)
  peptides = jax.random.randint(k_pep, (B, LP), 0, VOCAB, jnp.int32)
  hlas = jax.random.randint(k_hla, (B, LH), 0, VOCAB, jnp.int32)
  raw = init_params(k_par, VOCAB, D, HID, OUT_DIM, BETA_H)
  wp, dims = prep_params(raw)       # one-time packing / bf16 casting

  out = immunogenicity_classifier_forward(peptides, hlas, wp, dims)
  out = jax.block_until_ready(out)
  assert out.shape == (B, 2) and out.dtype == jnp.float32
  assert bool(jnp.all(jnp.isfinite(out)))
  # beta_mean must lie in (eps, 1-eps); beta_var positive
  assert bool(jnp.all(out[:, 0] > 0.0)) and bool(jnp.all(out[:, 0] < 1.0))
  assert bool(jnp.all(out[:, 1] > 0.0))
  print("KERNEL_OK")
</pallas_src>

<mosaic_0001>
module attributes {stable_mosaic.version = 11 : i64} {
  func.func @kernel(%arg0: i32, %arg1: memref<8x160xf32, #tpu.memory_space<vmem>>, %arg2: memref<8x2xf32, #tpu.memory_space<vmem>>, %arg3: memref<160x64xbf16, #tpu.memory_space<vmem>>, %arg4: memref<4x64x64xbf16, #tpu.memory_space<vmem>>, %arg5: memref<3x64x32xbf16, #tpu.memory_space<vmem>>, %arg6: memref<14x64xf32, #tpu.memory_space<vmem>>, %arg7: memref<8x2xf32, #tpu.memory_space<vmem>>) attributes {dimension_semantics = [#tpu.dimension_semantics<parallel>], iteration_bounds = array<i64: 1>, scalar_prefetch = 0 : i64, scratch_operands = 0 : i64, tpu.core_type = #tpu.core_type<tc>, window_params = [{transform_indices = @transform_0, window_bounds = array<i64: 8, 160>}, {transform_indices = @transform_1, window_bounds = array<i64: 8, 2>}, {pipeline_mode = #tpu.pipeline_mode<synchronous>, transform_indices = @transform_2, window_bounds = array<i64: 160, 64>}, {pipeline_mode = #tpu.pipeline_mode<synchronous>, transform_indices = @transform_3, window_bounds = array<i64: 4, 64, 64>}, {pipeline_mode = #tpu.pipeline_mode<synchronous>, transform_indices = @transform_4, window_bounds = array<i64: 3, 64, 32>}, {pipeline_mode = #tpu.pipeline_mode<synchronous>, transform_indices = @transform_5, window_bounds = array<i64: 14, 64>}, {transform_indices = @transform_6, window_bounds = array<i64: 8, 2>}]} {
    %c0 = arith.constant 0 : index
    %c0_0 = arith.constant 0 : index
    %0 = vector.load %arg6[%c0, %c0_0] : memref<14x64xf32, #tpu.memory_space<vmem>>, vector<1x64xf32>
    %c1 = arith.constant 1 : index
    %c0_1 = arith.constant 0 : index
    %1 = vector.load %arg6[%c1, %c0_1] : memref<14x64xf32, #tpu.memory_space<vmem>>, vector<1x64xf32>
    %c2 = arith.constant 2 : index
    %c0_2 = arith.constant 0 : index
    %2 = vector.load %arg6[%c2, %c0_2] : memref<14x64xf32, #tpu.memory_space<vmem>>, vector<1x64xf32>
    %c3 = arith.constant 3 : index
    %c0_3 = arith.constant 0 : index
    %3 = vector.load %arg6[%c3, %c0_3] : memref<14x64xf32, #tpu.memory_space<vmem>>, vector<1x64xf32>
    %c4 = arith.constant 4 : index
    %c0_4 = arith.constant 0 : index
    %4 = vector.load %arg6[%c4, %c0_4] : memref<14x64xf32, #tpu.memory_space<vmem>>, vector<1x64xf32>
    %c5 = arith.constant 5 : index
    %c0_5 = arith.constant 0 : index
    %5 = vector.load %arg6[%c5, %c0_5] : memref<14x64xf32, #tpu.memory_space<vmem>>, vector<1x64xf32>
    %c6 = arith.constant 6 : index
    %c0_6 = arith.constant 0 : index
    %6 = vector.load %arg6[%c6, %c0_6] : memref<14x64xf32, #tpu.memory_space<vmem>>, vector<1x64xf32>
    %c7 = arith.constant 7 : index
    %c0_7 = arith.constant 0 : index
    %7 = vector.load %arg6[%c7, %c0_7] : memref<14x64xf32, #tpu.memory_space<vmem>>, vector<1x64xf32>
    %c8 = arith.constant 8 : index
    %c0_8 = arith.constant 0 : index
    %8 = vector.load %arg6[%c8, %c0_8] : memref<14x64xf32, #tpu.memory_space<vmem>>, vector<1x64xf32>
    %c9 = arith.constant 9 : index
    %c0_9 = arith.constant 0 : index
    %9 = vector.load %arg6[%c9, %c0_9] : memref<14x64xf32, #tpu.memory_space<vmem>>, vector<1x32xf32>
    %c10 = arith.constant 10 : index
    %c0_10 = arith.constant 0 : index
    %10 = vector.load %arg6[%c10, %c0_10] : memref<14x64xf32, #tpu.memory_space<vmem>>, vector<1x32xf32>
    %c11 = arith.constant 11 : index
    %c0_11 = arith.constant 0 : index
    %11 = vector.load %arg6[%c11, %c0_11] : memref<14x64xf32, #tpu.memory_space<vmem>>, vector<1x32xf32>
    %c12 = arith.constant 12 : index
    %c0_12 = arith.constant 0 : index
    %12 = vector.load %arg6[%c12, %c0_12] : memref<14x64xf32, #tpu.memory_space<vmem>>, vector<1x32xf32>
    %c13 = arith.constant 13 : index
    %c0_13 = arith.constant 0 : index
    %13 = vector.load %arg6[%c13, %c0_13] : memref<14x64xf32, #tpu.memory_space<vmem>>, vector<1x2xf32>
    %c0_14 = arith.constant 0 : index
    %c0_15 = arith.constant 0 : index
    %14 = vector.load %arg1[%c0_14, %c0_15] : memref<8x160xf32, #tpu.memory_space<vmem>>, vector<8x160xf32>
    %c0_16 = arith.constant 0 : index
    %c0_17 = arith.constant 0 : index
    %15 = vector.load %arg3[%c0_16, %c0_17] : memref<160x64xbf16, #tpu.memory_space<vmem>>, vector<160x64xbf16>
    %16 = arith.truncf %14 : vector<8x160xf32> to vector<8x160xbf16>
    %cst = arith.constant dense<0.000000e+00> : vector<8x64xf32>
    %17 = tpu.matmul %16, %15, %cst {dimension_numbers = #tpu.dot_dimension_numbers<[1], [0], [0], [1], [0, 0, 1, 1], [], []>} : vector<8x160xbf16>, vector<160x64xbf16>, vector<8x64xf32> -> vector<8x64xf32>
    %18 = vector.broadcast %0 : vector<1x64xf32> to vector<8x64xf32>
    %19 = arith.addf %17, %18 : vector<8x64xf32>
    %c0_18 = arith.constant 0 : index
    %c0_19 = arith.constant 0 : index
    %c0_20 = arith.constant 0 : index
    %20 = vector.load %arg4[%c0_18, %c0_19, %c0_20] : memref<4x64x64xbf16, #tpu.memory_space<vmem>>, vector<1x64x64xbf16>
    %21 = vector.shape_cast %20 : vector<1x64x64xbf16> to vector<64x64xbf16>
    %c1_21 = arith.constant 1 : index
    %c0_22 = arith.constant 0 : index
    %c0_23 = arith.constant 0 : index
    %22 = vector.load %arg4[%c1_21, %c0_22, %c0_23] : memref<4x64x64xbf16, #tpu.memory_space<vmem>>, vector<1x64x64xbf16>
    %23 = vector.shape_cast %22 : vector<1x64x64xbf16> to vector<64x64xbf16>
    %cst_24 = arith.constant dense<0.000000e+00> : vector<8xf32>
    %24 = vector.multi_reduction <add>, %19, %cst_24 [1] : vector<8x64xf32> to vector<8xf32>
    %25 = vector.shape_cast %24 : vector<8xf32> to vector<8x1xf32>
    %cst_25 = arith.constant 6.400000e+01 : f32
    %26 = vector.broadcast %cst_25 : f32 to vector<8x1xf32>
    %27 = arith.divf %25, %26 : vector<8x1xf32>
    %28 = vector.broadcast %27 : vector<8x1xf32> to vector<8x64xf32>
    %29 = arith.subf %19, %28 : vector<8x64xf32>
    %30 = arith.mulf %29, %29 : vector<8x64xf32>
    %cst_26 = arith.constant dense<0.000000e+00> : vector<8xf32>
    %31 = vector.multi_reduction <add>, %30, %cst_26 [1] : vector<8x64xf32> to vector<8xf32>
    %32 = vector.shape_cast %31 : vector<8xf32> to vector<8x1xf32>
    %cst_27 = arith.constant 6.400000e+01 : f32
    %33 = vector.broadcast %cst_27 : f32 to vector<8x1xf32>
    %34 = arith.divf %32, %33 : vector<8x1xf32>
    %cst_28 = arith.constant 9.99999974E-6 : f32
    %35 = vector.broadcast %cst_28 : f32 to vector<8x1xf32>
    %36 = arith.addf %34, %35 : vector<8x1xf32>
    %37 = math.rsqrt %36 : vector<8x1xf32>
    %38 = vector.broadcast %37 : vector<8x1xf32> to vector<8x64xf32>
    %39 = arith.mulf %29, %38 : vector<8x64xf32>
    %40 = vector.broadcast %1 : vector<1x64xf32> to vector<8x64xf32>
    %41 = arith.mulf %39, %40 : vector<8x64xf32>
    %42 = vector.broadcast %2 : vector<1x64xf32> to vector<8x64xf32>
    %43 = arith.addf %41, %42 : vector<8x64xf32>
    %44 = arith.truncf %43 : vector<8x64xf32> to vector<8x64xbf16>
    %cst_29 = arith.constant dense<0.000000e+00> : vector<8x64xf32>
    %45 = tpu.matmul %44, %21, %cst_29 {dimension_numbers = #tpu.dot_dimension_numbers<[1], [0], [0], [1], [0, 0, 1, 1], [], []>} : vector<8x64xbf16>, vector<64x64xbf16>, vector<8x64xf32> -> vector<8x64xf32>
    %46 = vector.broadcast %3 : vector<1x64xf32> to vector<8x64xf32>
    %47 = arith.addf %45, %46 : vector<8x64xf32>
    %cst_30 = arith.constant 0.000000e+00 : f32
    %48 = vector.broadcast %cst_30 : f32 to vector<8x64xf32>
    %49 = arith.maximumf %47, %48 : vector<8x64xf32>
    %50 = arith.truncf %49 : vector<8x64xf32> to vector<8x64xbf16>
    %cst_31 = arith.constant dense<0.000000e+00> : vector<8x64xf32>
    %51 = tpu.matmul %50, %23, %cst_31 {dimension_numbers = #tpu.dot_dimension_numbers<[1], [0], [0], [1], [0, 0, 1, 1], [], []>} : vector<8x64xbf16>, vector<64x64xbf16>, vector<8x64xf32> -> vector<8x64xf32>
    %52 = vector.broadcast %4 : vector<1x64xf32> to vector<8x64xf32>
    %53 = arith.addf %51, %52 : vector<8x64xf32>
    %54 = arith.addf %19, %53 : vector<8x64xf32>
    %c2_32 = arith.constant 2 : index
    %c0_33 = arith.constant 0 : index
    %c0_34 = arith.constant 0 : index
    %55 = vector.load %arg4[%c2_32, %c0_33, %c0_34] : memref<4x64x64xbf16, #tpu.memory_space<vmem>>, vector<1x64x64xbf16>
    %56 = vector.shape_cast %55 : vector<1x64x64xbf16> to vector<64x64xbf16>
    %c3_35 = arith.constant 3 : index
    %c0_36 = arith.constant 0 : index
    %c0_37 = arith.constant 0 : index
    %57 = vector.load %arg4[%c3_35, %c0_36, %c0_37] : memref<4x64x64xbf16, #tpu.memory_space<vmem>>, vector<1x64x64xbf16>
    %58 = vector.shape_cast %57 : vector<1x64x64xbf16> to vector<64x64xbf16>
    %cst_38 = arith.constant dense<0.000000e+00> : vector<8xf32>
    %59 = vector.multi_reduction <add>, %54, %cst_38 [1] : vector<8x64xf32> to vector<8xf32>
    %60 = vector.shape_cast %59 : vector<8xf32> to vector<8x1xf32>
    %cst_39 = arith.constant 6.400000e+01 : f32
    %61 = vector.broadcast %cst_39 : f32 to vector<8x1xf32>
    %62 = arith.divf %60, %61 : vector<8x1xf32>
    %63 = vector.broadcast %62 : vector<8x1xf32> to vector<8x64xf32>
    %64 = arith.subf %54, %63 : vector<8x64xf32>
    %65 = arith.mulf %64, %64 : vector<8x64xf32>
    %cst_40 = arith.constant dense<0.000000e+00> : vector<8xf32>
    %66 = vector.multi_reduction <add>, %65, %cst_40 [1] : vector<8x64xf32> to vector<8xf32>
    %67 = vector.shape_cast %66 : vector<8xf32> to vector<8x1xf32>
    %cst_41 = arith.constant 6.400000e+01 : f32
    %68 = vector.broadcast %cst_41 : f32 to vector<8x1xf32>
    %69 = arith.divf %67, %68 : vector<8x1xf32>
    %cst_42 = arith.constant 9.99999974E-6 : f32
    %70 = vector.broadcast %cst_42 : f32 to vector<8x1xf32>
    %71 = arith.addf %69, %70 : vector<8x1xf32>
    %72 = math.rsqrt %71 : vector<8x1xf32>
    %73 = vector.broadcast %72 : vector<8x1xf32> to vector<8x64xf32>
    %74 = arith.mulf %64, %73 : vector<8x64xf32>
    %75 = vector.broadcast %5 : vector<1x64xf32> to vector<8x64xf32>
    %76 = arith.mulf %74, %75 : vector<8x64xf32>
    %77 = vector.broadcast %6 : vector<1x64xf32> to vector<8x64xf32>
    %78 = arith.addf %76, %77 : vector<8x64xf32>
    %79 = arith.truncf %78 : vector<8x64xf32> to vector<8x64xbf16>
    %cst_43 = arith.constant dense<0.000000e+00> : vector<8x64xf32>
    %80 = tpu.matmul %79, %56, %cst_43 {dimension_numbers = #tpu.dot_dimension_numbers<[1], [0], [0], [1], [0, 0, 1, 1], [], []>} : vector<8x64xbf16>, vector<64x64xbf16>, vector<8x64xf32> -> vector<8x64xf32>
    %81 = vector.broadcast %7 : vector<1x64xf32> to vector<8x64xf32>
    %82 = arith.addf %80, %81 : vector<8x64xf32>
    %cst_44 = arith.constant 0.000000e+00 : f32
    %83 = vector.broadcast %cst_44 : f32 to vector<8x64xf32>
    %84 = arith.maximumf %82, %83 : vector<8x64xf32>
    %85 = arith.truncf %84 : vector<8x64xf32> to vector<8x64xbf16>
    %cst_45 = arith.constant dense<0.000000e+00> : vector<8x64xf32>
    %86 = tpu.matmul %85, %58, %cst_45 {dimension_numbers = #tpu.dot_dimension_numbers<[1], [0], [0], [1], [0, 0, 1, 1], [], []>} : vector<8x64xbf16>, vector<64x64xbf16>, vector<8x64xf32> -> vector<8x64xf32>
    %87 = vector.broadcast %8 : vector<1x64xf32> to vector<8x64xf32>
    %88 = arith.addf %86, %87 : vector<8x64xf32>
    %89 = arith.addf %54, %88 : vector<8x64xf32>
    %c0_46 = arith.constant 0 : index
    %c0_47 = arith.constant 0 : index
    %c0_48 = arith.constant 0 : index
    %90 = vector.load %arg5[%c0_46, %c0_47, %c0_48] : memref<3x64x32xbf16, #tpu.memory_space<vmem>>, vector<1x64x32xbf16>
    %91 = vector.shape_cast %90 : vector<1x64x32xbf16> to vector<64x32xbf16>
    %92 = arith.truncf %89 : vector<8x64xf32> to vector<8x64xbf16>
    %cst_49 = arith.constant dense<0.000000e+00> : vector<8x32xf32>
    %93 = tpu.matmul %92, %91, %cst_49 {dimension_numbers = #tpu.dot_dimension_numbers<[1], [0], [0], [1], [0, 0, 1, 1], [], []>} : vector<8x64xbf16>, vector<64x32xbf16>, vector<8x32xf32> -> vector<8x32xf32>
    %94 = vector.broadcast %9 : vector<1x32xf32> to vector<8x32xf32>
    %95 = arith.addf %93, %94 : vector<8x32xf32>
    %c0_50 = arith.constant 0 : index
    %c0_51 = arith.constant 0 : index
    %96 = vector.load %arg2[%c0_50, %c0_51] : memref<8x2xf32, #tpu.memory_space<vmem>>, vector<8x1xf32>
    %97 = arith.negf %96 : vector<8x1xf32>
    %98 = math.exp %97 : vector<8x1xf32>
    %cst_52 = arith.constant 1.000000e+00 : f32
    %99 = vector.broadcast %cst_52 : f32 to vector<8x1xf32>
    %100 = arith.addf %99, %98 : vector<8x1xf32>
    %101 = arith.divf %99, %100 : vector<8x1xf32>
    %c0_53 = arith.constant 0 : index
    %c1_54 = arith.constant 1 : index
    %102 = vector.load %arg2[%c0_53, %c1_54] : memref<8x2xf32, #tpu.memory_space<vmem>>, vector<8x1xf32>
    %103 = vector.broadcast %101 : vector<8x1xf32> to vector<8x32xf32>
    %104 = vector.broadcast %10 : vector<1x32xf32> to vector<8x32xf32>
    %105 = arith.mulf %103, %104 : vector<8x32xf32>
    %106 = vector.broadcast %102 : vector<8x1xf32> to vector<8x32xf32>
    %107 = vector.broadcast %11 : vector<1x32xf32> to vector<8x32xf32>
    %108 = arith.mulf %106, %107 : vector<8x32xf32>
    %109 = arith.addf %105, %108 : vector<8x32xf32>
    %c1_55 = arith.constant 1 : index
    %c0_56 = arith.constant 0 : index
    %c0_57 = arith.constant 0 : index
    %110 = vector.load %arg5[%c1_55, %c0_56, %c0_57] : memref<3x64x32xbf16, #tpu.memory_space<vmem>>, vector<1x32x32xbf16>
    %111 = vector.shape_cast %110 : vector<1x32x32xbf16> to vector<32x32xbf16>
    %112 = arith.truncf %95 : vector<8x32xf32> to vector<8x32xbf16>
    %cst_58 = arith.constant dense<0.000000e+00> : vector<8x32xf32>
    %113 = tpu.matmul %112, %111, %cst_58 {dimension_numbers = #tpu.dot_dimension_numbers<[1], [0], [0], [1], [0, 0, 1, 1], [], []>} : vector<8x32xbf16>, vector<32x32xbf16>, vector<8x32xf32> -> vector<8x32xf32>
    %114 = arith.addf %109, %113 : vector<8x32xf32>
    %115 = vector.broadcast %12 : vector<1x32xf32> to vector<8x32xf32>
    %116 = arith.addf %114, %115 : vector<8x32xf32>
    %cst_59 = arith.constant 0.000000e+00 : f32
    %117 = vector.broadcast %cst_59 : f32 to vector<8x32xf32>
    %118 = arith.maximumf %116, %117 : vector<8x32xf32>
    %c2_60 = arith.constant 2 : index
    %c0_61 = arith.constant 0 : index
    %c0_62 = arith.constant 0 : index
    %119 = vector.load %arg5[%c2_60, %c0_61, %c0_62] : memref<3x64x32xbf16, #tpu.memory_space<vmem>>, vector<1x32x32xbf16>
    %120 = vector.shape_cast %119 : vector<1x32x32xbf16> to vector<32x32xbf16>
    %121 = arith.truncf %118 : vector<8x32xf32> to vector<8x32xbf16>
    %cst_63 = arith.constant dense<0.000000e+00> : vector<8x32xf32>
    %122 = tpu.matmul %121, %120, %cst_63 {dimension_numbers = #tpu.dot_dimension_numbers<[1], [0], [0], [1], [0, 0, 1, 1], [], []>} : vector<8x32xbf16>, vector<32x32xbf16>, vector<8x32xf32> -> vector<8x32xf32>
    %123 = vector.extract_strided_slice %122 {offsets = [0, 0], sizes = [8, 2], strides = [1, 1]} : vector<8x32xf32> to vector<8x2xf32>
    %124 = vector.broadcast %13 : vector<1x2xf32> to vector<8x2xf32>
    %125 = arith.addf %123, %124 : vector<8x2xf32>
    %126 = arith.negf %125 : vector<8x2xf32>
    %127 = math.exp %126 : vector<8x2xf32>
    %cst_64 = arith.constant 1.000000e+00 : f32
    %128 = vector.broadcast %cst_64 : f32 to vector<8x2xf32>
    %129 = arith.addf %128, %127 : vector<8x2xf32>
    %130 = arith.divf %128, %129 : vector<8x2xf32>
    %131 = vector.extract_strided_slice %130 {offsets = [0, 0], sizes = [8, 1], strides = [1, 1]} : vector<8x2xf32> to vector<8x1xf32>
    %132 = vector.extract_strided_slice %130 {offsets = [0, 1], sizes = [8, 1], strides = [1, 1]} : vector<8x2xf32> to vector<8x1xf32>
    %cst_65 = arith.constant 9.980000e-01 : f32
    %133 = vector.broadcast %cst_65 : f32 to vector<8x1xf32>
    %134 = arith.mulf %133, %131 : vector<8x1xf32>
    %cst_66 = arith.constant 1.000000e-03 : f32
    %135 = vector.broadcast %cst_66 : f32 to vector<8x1xf32>
    %136 = arith.addf %135, %134 : vector<8x1xf32>
    %cst_67 = arith.constant 3.000000e+00 : f32
    %137 = vector.broadcast %cst_67 : f32 to vector<8x1xf32>
    %138 = arith.divf %132, %137 : vector<8x1xf32>
    %cst_68 = arith.constant 9.980000e-01 : f32
    %139 = vector.broadcast %cst_68 : f32 to vector<8x1xf32>
    %140 = arith.mulf %139, %138 : vector<8x1xf32>
    %141 = arith.mulf %140, %136 : vector<8x1xf32>
    %cst_69 = arith.constant 1.000000e+00 : f32
    %142 = vector.broadcast %cst_69 : f32 to vector<8x1xf32>
    %143 = arith.subf %142, %136 : vector<8x1xf32>
    %144 = arith.mulf %141, %143 : vector<8x1xf32>
    %cst_70 = arith.constant 1.000000e-03 : f32
    %145 = vector.broadcast %cst_70 : f32 to vector<8x1xf32>
    %146 = arith.addf %145, %144 : vector<8x1xf32>
    %147 = tpu.concatenate %136, %146 in 1 : vector<8x1xf32>, vector<8x1xf32> -> vector<8x2xf32>
    %c0_71 = arith.constant 0 : index
    %c0_72 = arith.constant 0 : index
    %148 = vector.load %arg7[%c0_71, %c0_72] : memref<8x2xf32, #tpu.memory_space<vmem>>, vector<8x2xf32>
    tpu.vector_store %arg7[%c0_71, %c0_72], %147 {strides = array<i32>} : memref<8x2xf32, #tpu.memory_space<vmem>>, vector<8x2xf32>,
    return
  }
  func.func @transform_0(%arg0: i32) -> (i32, i32) {
    %c0_i32 = arith.constant 0 : i32
    %c0_i32_0 = arith.constant 0 : i32
    return %arg0, %c0_i32 : i32, i32
  }
  func.func @transform_1(%arg0: i32) -> (i32, i32) {
    %c0_i32 = arith.constant 0 : i32
    %c0_i32_0 = arith.constant 0 : i32
    return %arg0, %c0_i32 : i32, i32
  }
  func.func @transform_2(%arg0: i32) -> (i32, i32) {
    %c0_i32 = arith.constant 0 : i32
    %c0_i32_0 = arith.constant 0 : i32
    %c0_i32_1 = arith.constant 0 : i32
    return %c0_i32, %c0_i32_0 : i32, i32
  }
  func.func @transform_3(%arg0: i32) -> (i32, i32, i32) {
    %c0_i32 = arith.constant 0 : i32
    %c0_i32_0 = arith.constant 0 : i32
    %c0_i32_1 = arith.constant 0 : i32
    %c0_i32_2 = arith.constant 0 : i32
    return %c0_i32, %c0_i32_0, %c0_i32_1 : i32, i32, i32
  }
  func.func @transform_4(%arg0: i32) -> (i32, i32, i32) {
    %c0_i32 = arith.constant 0 : i32
    %c0_i32_0 = arith.constant 0 : i32
    %c0_i32_1 = arith.constant 0 : i32
    %c0_i32_2 = arith.constant 0 : i32
    return %c0_i32, %c0_i32_0, %c0_i32_1 : i32, i32, i32
  }
  func.func @transform_5(%arg0: i32) -> (i32, i32) {
    %c0_i32 = arith.constant 0 : i32
    %c0_i32_0 = arith.constant 0 : i32
    %c0_i32_1 = arith.constant 0 : i32
    return %c0_i32, %c0_i32_0 : i32, i32
  }
  func.func @transform_6(%arg0: i32) -> (i32, i32) {
    %c0_i32 = arith.constant 0 : i32
    %c0_i32_0 = arith.constant 0 : i32
    return %arg0, %c0_i32 : i32, i32
  }
}

</mosaic_0001>

<bundles_post_ra>
// kernel: immunogenicity_classifier_forward.1
= control target key start
LH: loop header
LB: loop body
LE: loop exit
PB: predicated region body
PF: predicated region fallthrough
CT: control target
= control target key end

     0   :  { %v1069_v0 = vmov 0   ;;  %vm126_vm0 = vcmask 261120   ;;  %vm187_vm1 = vcmask 523264   ;;  %v1070_v27 = vmov 0.0   ;;  %s1073_s18 = smov 1   ;;  %s1325_s2 = inlined_call_operand.vmem [shape: bf16[160,64], index: 2, kind: input, shape index: {}]   ;;  %s1326_s0 = inlined_call_operand.vmem [shape: f32[8,160], index: 0, kind: input, shape index: {}]   ;;  %s1327_s5 = inlined_call_operand.vmem [shape: f32[14,64], index: 5, kind: input, shape index: {}]   ;;  %s1328_s3 = inlined_call_operand.vmem [shape: bf16[4,64,64], index: 3, kind: input, shape index: {}]   ;;  %s1329_s4 = inlined_call_operand.vmem [shape: bf16[3,64,32], index: 4, kind: input, shape index: {}]   ;;  %s1330_s1 = inlined_call_operand.vmem [shape: f32[8,2], index: 1, kind: input, shape index: {}]   ;;  %s1331_s6 = inlined_call_operand.vmem [shape: f32[8,2], index: 6, kind: output, shape index: {}]  }
   0x1   :  { %130 = vmatprep.subr.bf16.mxu0 %v1069_v0  ;;  %v1023_v1 = vld [vmem:[%s1325_s2] sm:$0xff]   ;;  %1020 = vset.pattern.permute.xlu0 %v1069_v0  ;;  %v1024_v2 = vld [vmem:[%s1325_s2 + $0x8] sm:$0xff]   ;;  %v1025_v3 = vld [vmem:[%s1325_s2 + $0x10] sm:$0xff]   ;;  %vm1071_vm2 = vmmov 0   ;;  %vm810_vm3 = vcmask 7168   ;;  %vm812_vm4 = vcmask 15360  }
   0x2   :  { %131 = vmatpush1.bf16.msra.mxu0 %v1023_v1  ;;  %v1026_v4 = vld [vmem:[%s1325_s2 + $0x18] sm:$0xff]   ;;  %v39_v5 = vld [vmem:[%s1326_s0 + $0x8] sm:$0xff]  ;;  %v1027_v7 = vld [vmem:[%s1325_s2 + $0x20] sm:$0xff]   ;;  %939 = vmatprep.subr.bf16.mxu1 %v1070_v27 }
   0x3   :  { %132 = vmatprep.subr.bf16.mxu0 %v1069_v0  ;;  %v61_v6 = vpack.c.bf16 %v39_v5, %v39_v5  ;;  %v1028_v8 = vld [vmem:[%s1325_s2 + $0x28] sm:$0xff]   ;;  %v1029_v9 = vld [vmem:[%s1325_s2 + $0x30] sm:$0xff]   ;;  %v1030_v10 = vld [vmem:[%s1325_s2 + $0x38] sm:$0xff]   ;;  %947 = vmatprep.mubr.msk.bf16.mxu1 %vm1071_vm2, %v1070_v27 }
   0x4   :  { %v1031_v11 = vld [vmem:[%s1325_s2 + $0x40] sm:$0xff]   ;;  %v1032_v12 = vld [vmem:[%s1325_s2 + $0x48] sm:$0xff]   ;;  %v1035_v30 = vld [vmem:[%s1328_s3 + $0x10] sm:$0xff]  }
   0x5   :  { %829 = vmatprep.mubr.msk.bf16.mxu0 %vm126_vm0, %v61_v6  ;;  %v38_v13 = vld [vmem:[%s1326_s0] sm:$0xff]  ;;  %v1034_v29 = vld [vmem:[%s1328_s3 + $0x8] sm:$0xff]   ;;  %v1036_v31 = vld [vmem:[%s1328_s3 + $0x18] sm:$0xff]  }
   0x6   :  { %133 = vmatpush1.bf16.msra.mxu0 %v1024_v2  ;;  %v60_v14 = vpack.c.bf16 %v38_v13, %v38_v13  ;;  %v818_v15 = vld [vmem:[%s1327_s5] ss:$0 sm:$0xff]  ;;  %v838_v36 = vld [vmem:[%s1327_s5 + $0x1] ss:$0 sm:$0xff]  ;;  %v839_v38 = vld [vmem:[%s1327_s5 + $0x2] ss:$0 sm:$0xff] }
   0x7   :  { %134 = vmatprep.subr.bf16.mxu0 %v1069_v0  ;;  %v1033_v28 = vld [vmem:[%s1328_s3] sm:$0xff]   ;;  %v1038_v43 = vld [vmem:[%s1328_s3 + $0x28] sm:$0xff]   ;;  %v1039_v44 = vld [vmem:[%s1328_s3 + $0x30] sm:$0xff]  }
   0x8   :  { %940 = vmatpush3.bf16.msra.mxu1 %v1033_v28  ;;  %v1037_v41 = vld [vmem:[%s1328_s3 + $0x20] sm:$0xff]   ;;  %v1040_v45 = vld [vmem:[%s1328_s3 + $0x38] sm:$0xff]   ;;  %v1043_v5 = vld [vmem:[%s1328_s3 + $0x50] sm:$0xff]  }
   0x9   :  { %941 = vmatprep.subr.bf16.mxu1 %v1070_v27  ;;  %v840_v46 = vld [vmem:[%s1327_s5 + $0x3] ss:$0 sm:$0xff]  ;;  %v846_v54 = vld [vmem:[%s1327_s5 + $0x4] ss:$0 sm:$0xff]  ;;  %v1044_v6 = vld [vmem:[%s1328_s3 + $0x58] sm:$0xff]  }
   0xa   :  { %135 = vmatpush1.bf16.msra.mxu0 %v1025_v3  ;;  %v1041_v3 = vld [vmem:[%s1328_s3 + $0x40] sm:$0xff]  }
   0xb   :  { %136 = vmatprep.subr.bf16.mxu0 %v1069_v0  ;;  %v868_v13 = vld [vmem:[%s1327_s5 + $0x5] ss:$0 sm:$0xff] }
   0xc   :  { %942 = vmatpush3.bf16.msra.mxu1 %v1034_v29 }
   0xd   :  { %943 = vmatprep.subr.bf16.mxu1 %v1070_v27 }
   0xe   :  { %137 = vmatpush1.bf16.msra.mxu0 %v1026_v4  ;;  %v1042_v4 = vld [vmem:[%s1328_s3 + $0x48] sm:$0xff]  }
   0xf   :  { %138 = vmatprep.subr.bf16.mxu0 %v1069_v0 }
  0x10   :  { %944 = vmatpush3.bf16.msra.mxu1 %v1035_v30 }
  0x11   :  { %945 = vmatprep.subr.bf16.mxu1 %v1070_v27 }
  0x12   :  { %139 = vmatpush1.bf16.msra.mxu0 %v1027_v7  ;;  %v1045_v7 = vld [vmem:[%s1328_s3 + $0x60] sm:$0xff]  }
  0x13   :  { %140 = vmatprep.subr.bf16.mxu0 %v1069_v0 }
  0x14   :  { %946 = vmatpush3.bf16.msra.mxu1 %v1036_v31 }
  0x15   :  { %951 = vmatprep.subr.bf16.mxu1 %v1070_v27 }
  0x16   :  { %141 = vmatpush1.bf16.msra.mxu0 %v1028_v8  ;;  %v1046_v8 = vld [vmem:[%s1328_s3 + $0x68] sm:$0xff]  }
  0x17   :  { %142 = vmatprep.subr.bf16.mxu0 %v1069_v0 }
  0x1a   :  { %143 = vmatpush1.bf16.msra.mxu0 %v1029_v9 }
  0x1b   :  { %144 = vmatprep.subr.bf16.mxu0 %v1069_v0 }
  0x1e   :  { %145 = vmatpush1.bf16.msra.mxu0 %v1030_v10 }
  0x1f   :  { %146 = vmatprep.subr.bf16.mxu0 %v1069_v0 }
  0x22   :  { %147 = vmatpush1.bf16.msra.mxu0 %v1031_v11 }
  0x23   :  { %148 = vmatprep.subr.bf16.mxu0 %v1069_v0 }
  0x26   :  { %149 = vmatpush1.bf16.msra.mxu0 %v1032_v12 }
  0x27   :  { %975 = vmatprep.subr.bf16.mxu0 %v1070_v27 }
  0x29   :  { %163 = vmatmul.mubr.bf16.vlgmr.msra.gmra.mrb[0].mxu0 %v60_v14 }
  0x2a   :  { %983 = vmatprep.mubr.msk.bf16.mxu0 %vm1071_vm2, %v1070_v27  ;;  %976 = vmatpush3.bf16.msra.mxu0 %v1045_v7 }
  0x2b   :  { %977 = vmatprep.subr.bf16.mxu0 %v1070_v27 }
  0x2e   :  { %978 = vmatpush3.bf16.msra.mxu0 %v1046_v8 }
  0x2f   :  { %979 = vmatprep.subr.bf16.mxu0 %v1070_v27 }
  0xfc   :  { %v164_v16 = vpop.f32.mrb[0].mxu0 }
  0xfd   :  { %v1149_v17 = vadd.f32 %v818_v15, %v164_v16  ;;  %v166_v18 = vpop.f32.mrb[1].mxu0  ;;  %v869_v15 = vld [vmem:[%s1327_s5 + $0x6] ss:$0 sm:$0xff] }
  0xfe   :  { %v167_v19 = vpop.f32.mrb[2].mxu0 }
  0xff   :  { %v168_v20 = vpop.f32.mrb[3].mxu0  ;;  %v188_v21 = vsel %vm187_vm1, %v1149_v17, 0.0  ;;  %v1047_v19 = vld [vmem:[%s1328_s3 + $0x70] sm:$0xff]  }
 0x100   :  { %189 = vadd.xlane.f32.xlu0 %v188_v21  ;;  %980 = vmatpush3.bf16.msra.mxu0 %v1047_v19  ;;  %v1048_v20 = vld [vmem:[%s1328_s3 + $0x78] sm:$0xff]   ;;  %v1049_v21 = vld [vmem:[%s1329_s4] sm:$0xff]  }
 0x101   :  { %981 = vmatprep.subr.bf16.mxu0 %v1070_v27 }
 0x104   :  { %982 = vmatpush3.bf16.msra.mxu0 %v1048_v20 }
 0x105   :  { %999 = vmatprep.subr.bf16.mxu0 %v1070_v27 }
 0x18d   :  { %v190_v22 = vpop.xlane.xlu0 %189 }
 0x18e   :  { %v192_v23 = vmul.f32 0.015625, %v190_v22  ;;  %v1050_v22 = vld [vmem:[%s1329_s4 + $0x8] sm:$0xff]  }
 0x190   :  { %v193_v24 = vsub.f32 %v1149_v17, %v192_v23  ;;  %v870_v23 = vld [vmem:[%s1327_s5 + $0x7] ss:$0 sm:$0xff] }
 0x192   :  { %v194_v25 = vmul.f32 %v193_v24, %v193_v24 }
 0x194   :  { %v195_v26 = vsel %vm187_vm1, %v194_v25, 0.0 }
 0x195   :  { %196 = vadd.xlane.f32.xlu0 %v195_v26 }
 0x222   :  { %v197_v32 = vpop.xlane.xlu0 %196 }
 0x223   :  { %v198_v33 = vmul.f32 0.015625, %v197_v32  ;;  %v1051_v32 = vld [vmem:[%s1329_s4 + $0x10] sm:$0xff]  }
 0x225   :  { %v199_v34 = vadd.f32 1e-05, %v198_v33  ;;  %v1052_v33 = vld [vmem:[%s1329_s4 + $0x18] sm:$0xff]  }
 0x227   :  { %1057 = vrsqrt.f32 %v199_v34  ;;  %v1053_v34 = vld [vmem:[%s1329_s4 + $0x20] sm:$0xff]  }
 0x231   :  { %v1058_v35 = vpop.eup %1057 }
 0x232   :  { %v201_v37 = vmul.f32 %v1058_v35, %v193_v24  ;;  %v876_v35 = vld [vmem:[%s1327_s5 + $0x8] ss:$0 sm:$0xff] }
 0x234   :  { %v206_v39 = vmul.f32 %v838_v36, %v201_v37 }
 0x236   :  { %v211_v40 = vadd.f32 %v839_v38, %v206_v39 }
 0x238   :  { %v212_v42 = vpack.c.bf16 %v211_v40, %v211_v40 }
 0x23a   :  { %948 = vmatmul.mubr.msk.bf16.vlgmr.msra.gmra.mrb[0].mxu1 %vm187_vm1, %v212_v42 }
 0x23b   :  { %952 = vmatpush3.bf16.msra.mxu1 %v1037_v41  ;;  %959 = vmatprep.mubr.msk.bf16.mxu1 %vm1071_vm2, %v1070_v27 }
 0x23c   :  { %953 = vmatprep.subr.bf16.mxu1 %v1070_v27 }
 0x23f   :  { %954 = vmatpush3.bf16.msra.mxu1 %v1038_v43  ;;  %v1054_v43 = vld [vmem:[%s1329_s4 + $0x28] sm:$0xff]  }
 0x240   :  { %955 = vmatprep.subr.bf16.mxu1 %v1070_v27 }
 0x243   :  { %956 = vmatpush3.bf16.msra.mxu1 %v1039_v44  ;;  %v1072_v44 = vmov 1  }
 0x244   :  { %957 = vmatprep.subr.bf16.mxu1 %v1070_v27  ;;  %1021 = vset.pattern.permute.xlu1 %v1072_v44 }
 0x247   :  { %958 = vmatpush3.bf16.msra.mxu1 %v1040_v45  ;;  %v625_v45 = vld [vmem:[%s1330_s1] sm:$0xff] }
 0x248   :  { %963 = vmatprep.subr.bf16.mxu1 %v1070_v27 }
 0x30d   :  { %v278_v47 = vpop.f32.mrb[0].mxu1 }
 0x30e   :  { %v279_v48 = vadd.f32 %v840_v46, %v278_v47  ;;  %v949_v49 = vpop.f32.mrb[1].mxu1  ;;  %v888_v46 = vmul.f32 -1.442695, %v625_v45 }
 0x30f   :  { %v281_v50 = vpop.f32.mrb[2].mxu1 }
 0x310   :  { %v284_v51 = vmax.f32 %v279_v48, 0.0  ;;  %v950_v52 = vpop.f32.mrb[3].mxu1  ;;  %v882_v50 = vld [vmem:[%s1327_s5 + $0x9] ss:$0 sm:$0xff] }
 0x312   :  { %v285_v53 = vpack.c.bf16 %v284_v51, %v284_v51 }
 0x314   :  { %960 = vmatmul.mubr.msk.bf16.vlgmr.msra.gmra.mrb[4].mxu1 %vm187_vm1, %v285_v53 }
 0x315   :  { %971 = vmatprep.mubr.msk.bf16.mxu1 %vm1071_vm2, %v1070_v27  ;;  %964 = vmatpush3.bf16.msra.mxu1 %v1041_v3 }
 0x316   :  { %965 = vmatprep.subr.bf16.mxu1 %v1070_v27 }
 0x319   :  { %966 = vmatpush3.bf16.msra.mxu1 %v1042_v4 }
 0x31a   :  { %967 = vmatprep.subr.bf16.mxu1 %v1070_v27 }
 0x31d   :  { %968 = vmatpush3.bf16.msra.mxu1 %v1043_v5 }
 0x31e   :  { %969 = vmatprep.subr.bf16.mxu1 %v1070_v27 }
 0x321   :  { %970 = vmatpush3.bf16.msra.mxu1 %v1044_v6 }
 0x322   :  { %987 = vmatprep.subr.bf16.mxu1 %v1070_v27 }
 0x3e7   :  { %v351_v55 = vpop.f32.mrb[4].mxu1 }
 0x3e8   :  { %v352_v56 = vadd.f32 %v846_v54, %v351_v55  ;;  %v961_v57 = vpop.f32.mrb[5].mxu1 }
 0x3e9   :  { %v354_v58 = vpop.f32.mrb[6].mxu1  ;;  %v1055_v57 = vld [vmem:[%s1329_s4 + $0x40] sm:$0xff]  }
 0x3ea   :  { %v1212_v59 = vadd.f32 %v352_v56, %v1149_v17  ;;  %v962_v60 = vpop.f32.mrb[7].mxu1  ;;  %v1056_v58 = vld [vmem:[%s1329_s4 + $0x48] sm:$0xff]  }
 0x3ec   :  { %v376_v61 = vsel %vm187_vm1, %v1212_v59, 0.0 }
 0x3ed   :  { %377 = vadd.xlane.f32.xlu1 %v376_v61  ;;  %v889_v61 = vld [vmem:[%s1327_s5 + $0xa] ss:$0 sm:$0xff] }
 0x47a   :  { %v378_v62 = vpop.xlane.xlu1 %377 }
 0x47b   :  { %v379_v63 = vmul.f32 0.015625, %v378_v62 }
 0x47d   :  { %v380_v0 = vsub.f32 %v1212_v59, %v379_v63 }
 0x47f   :  { %v381_v1 = vmul.f32 %v380_v0, %v380_v0 }
 0x481   :  { %v382_v2 = vsel %vm187_vm1, %v381_v1, 0.0 }
 0x482   :  { %383 = vadd.xlane.f32.xlu1 %v382_v2 }
 0x493   :  { %644 = vperm.xlu1 %1021, %v625_v45  }
 0x50f   :  { %v384_v9 = vpop.xlane.xlu1 %383 }
 0x510   :  { %v385_v10 = vmul.f32 0.015625, %v384_v9 }
 0x512   :  { %v386_v11 = vadd.f32 1e-05, %v385_v10  ;;  %v906_v10 = vld [vmem:[%s1327_s5 + $0xd] ss:$0 sm:$0xff] }
 0x513   :  { %v645_v60 = vpop.permute.xlu1 %644 }
 0x514   :  { %1059 = vrsqrt.f32 %v386_v11 }
 0x515   :  { %1061 = vpow2.f32 %v888_v46 }
 0x51e   :  { %v1060_v12 = vpop.eup %1059 }
 0x51f   :  { %v388_v14 = vmul.f32 %v1060_v12, %v380_v0  ;;  %v1062_v47 = vpop.eup %1061 }
 0x520   :  { %v629_v48 = vadd.f32 1.0, %v1062_v47 }
 0x521   :  { %v393_v16 = vmul.f32 %v868_v13, %v388_v14 }
 0x522   :  { %1063 = vrcp.f32 %v629_v48 }
 0x523   :  { %v398_v17 = vadd.f32 %v869_v15, %v393_v16 }
 0x525   :  { %v399_v18 = vpack.c.bf16 %v398_v17, %v398_v17 }
 0x527   :  { %972 = vmatmul.mubr.msk.bf16.vlgmr.msra.gmra.mrb[8].mxu1 %vm187_vm1, %v399_v18 }
 0x528   :  { %995 = vmatprep.mubr.msk.bf16.mxu1 %vm1071_vm2, %v1070_v27  ;;  %988 = vmatpush3.bf16.msra.mxu1 %v1049_v21 }
 0x529   :  { %989 = vmatprep.subr.bf16.mxu1 %v1070_v27 }
 0x52c   :  { %990 = vmatpush3.bf16.msra.mxu1 %v1050_v22  ;;  %v1064_v49 = vpop.eup %1063 }
 0x52d   :  { %991 = vmatprep.subr.bf16.mxu1 %v1070_v27  ;;  %634 = vperm.xlu0 %1020, %v1064_v49  }
 0x530   :  { %992 = vmatpush3.bf16.msra.mxu1 %v1051_v32 }
 0x531   :  { %993 = vmatprep.subr.bf16.mxu1 %v1070_v27  ;;  %1022 = vset.pattern.permute.xlu0 %v1072_v44 }
 0x534   :  { %994 = vmatpush3.bf16.msra.mxu1 %v1052_v33 }
 0x5ac   :  { %v635_v62 = vpop.permute.xlu0 %634 }
 0x5ad   :  { %v641_v0 = vmul.f32 %v889_v61, %v635_v62 }
 0x5fa   :  { %v465_v24 = vpop.f32.mrb[8].mxu1 }
 0x5fb   :  { %v466_v25 = vadd.f32 %v870_v23, %v465_v24  ;;  %v973_v26 = vpop.f32.mrb[9].mxu1 }
 0x5fc   :  { %v468_v28 = vpop.f32.mrb[10].mxu1 }
 0x5fd   :  { %v471_v29 = vmax.f32 %v466_v25, 0.0  ;;  %v974_v30 = vpop.f32.mrb[11].mxu1 }
 0x5ff   :  { %v472_v31 = vpack.c.bf16 %v471_v29, %v471_v29 }
 0x601   :  { %984 = vmatmul.mubr.msk.bf16.vlgmr.msra.gmra.mrb[4].mxu0 %vm187_vm1, %v472_v31 }
 0x602   :  { %1003 = vmatprep.mubr.msk.bf16.mxu0 %vm1071_vm2, %v1070_v27  ;;  %1000 = vmatpush3.bf16.msra.mxu0 %v1053_v34 }
 0x603   :  { %1001 = vmatprep.subr.bf16.mxu0 %v1070_v27 }
 0x606   :  { %1002 = vmatpush3.bf16.msra.mxu0 %v1054_v43 }
 0x607   :  { %1007 = vmatprep.subr.bf16.mxu0 %v1070_v27 }
 0x6d4   :  { %v538_v36 = vpop.f32.mrb[4].mxu0 }
 0x6d5   :  { %v539_v37 = vadd.f32 %v876_v35, %v538_v36  ;;  %v985_v38 = vpop.f32.mrb[5].mxu0 }
 0x6d6   :  { %v541_v39 = vpop.f32.mrb[6].mxu0 }
 0x6d7   :  { %v544_v40 = vadd.f32 %v539_v37, %v1212_v59  ;;  %v986_v41 = vpop.f32.mrb[7].mxu0  ;;  %v890_v59 = vld [vmem:[%s1327_s5 + $0xb] ss:$0 sm:$0xff] }
 0x6d8   :  { %v651_v63 = vmul.f32 %v890_v59, %v645_v60 }
 0x6d9   :  { %v553_v42 = vpack.c.bf16 %v544_v40, %v544_v40 }
 0x6da   :  { %v652_v1 = vadd.f32 %v651_v63, %v641_v0 }
 0x6db   :  { %996 = vmatmul.mubr.msk.bf16.vlgmr.msra.gmra.mrb[12].mxu1 %vm187_vm1, %v553_v42 }
 0x7ae   :  { %v619_v51 = vpop.f32.mrb[12].mxu1 }
 0x7af   :  { %v620_v52 = vadd.f32 %v882_v50, %v619_v51  ;;  %v997_v53 = vpop.f32.mrb[13].mxu1 }
 0x7b0   :  { %v622_v54 = vpop.f32.mrb[14].mxu1 }
 0x7b1   :  { %v658_v55 = vpack.c.bf16 %v620_v52, %v620_v52  ;;  %v998_v56 = vpop.f32.mrb[15].mxu1 }
 0x7b3   :  { %1004 = vmatmul.mubr.msk.bf16.vlgmr.msra.gmra.mrb[8].mxu0 %vm126_vm0, %v658_v55 }
 0x7b4   :  { %1011 = vmatprep.mubr.msk.bf16.mxu0 %vm1071_vm2, %v1070_v27  ;;  %1008 = vmatpush3.bf16.msra.mxu0 %v1055_v57 }
 0x7b5   :  { %1009 = vmatprep.subr.bf16.mxu0 %v1070_v27  ;;  %v898_v27 = vld [vmem:[%s1327_s5 + $0xc] ss:$0 sm:$0xff] }
 0x7b8   :  { %1010 = vmatpush3.bf16.msra.mxu0 %v1056_v58 }
 0x886   :  { %v708_v2 = vpop.f32.mrb[8].mxu0 }
 0x887   :  { %v714_v3 = vadd.f32 %v708_v2, %v652_v1  ;;  %v1005_v4 = vpop.f32.mrb[9].mxu0 }
 0x888   :  { %v711_v5 = vpop.f32.mrb[10].mxu0 }
 0x889   :  { %v719_v6 = vadd.f32 %v898_v27, %v714_v3  ;;  %v1006_v7 = vpop.f32.mrb[11].mxu0 }
 0x88b   :  { %v720_v8 = vmax.f32 %v719_v6, 0.0 }
 0x88d   :  { %v726_v9 = vpack.c.bf16 %v720_v8, %v720_v8 }
 0x88f   :  { %1012 = vmatmul.mubr.msk.bf16.vlgmr.msra.gmra.mrb[12].mxu0 %vm126_vm0, %v726_v9 }
 0x962   :  { %v776_v11 = vpop.f32.mrb[12].mxu0 }
 0x963   :  { %v786_v12 = vadd.f32 %v906_v10, %v776_v11  ;;  %v1013_v13 = vpop.f32.mrb[13].mxu0 }
 0x964   :  { %v779_v14 = vpop.f32.mrb[14].mxu0 }
 0x965   :  { %v907_v15 = vmul.f32 -1.442695, %v786_v12  ;;  %v1014_v16 = vpop.f32.mrb[15].mxu0 }
 0x967   :  { %1065 = vpow2.f32 %v907_v15 }
 0x971   :  { %v1066_v17 = vpop.eup %1065 }
 0x972   :  { %v790_v18 = vadd.f32 1.0, %v1066_v17 }
 0x974   :  { %1067 = vrcp.f32 %v790_v18 }
 0x97e   :  { %v1068_v19 = vpop.eup %1067 }
 0x97f   :  { %v793_v20 = vmul.f32 0.998, %v1068_v19  ;;  %v796_v23 = vmul.f32 0.33333334, %v1068_v19 }
 0x981   :  { %v794_v21 = vadd.f32 0.001, %v793_v20  ;;  %v797_v25 = vmul.f32 0.998, %v796_v23 }
 0x983   :  { %799 = vrot.lane.b32.xlu1 %v794_v21, %s1073_s18  ;;  %v803_v22 = vsub.f32 1.0, %v794_v21 }
 0x987   :  { %805 = vrot.lane.b32.xlu1 %v803_v22, %s1073_s18 }
 0x9f5   :  { %v800_v24 = vpop.permute.xlu1 %799 }
 0x9f6   :  { %v802_v26 = vmul.f32 %v800_v24, %v797_v25 }
 0x9f9   :  { %v806_v28 = vpop.permute.xlu1 %805 }
 0x9fa   :  { %v808_v29 = vmul.f32 %v806_v28, %v802_v26 }
 0x9fc   :  { %v809_v30 = vadd.f32 0.001, %v808_v29 }
 0x9fe   :  { %v811_v31 = vsel %vm810_vm3, %v794_v21, %v809_v30 }
 0x9ff   :  { %813 = vst.msk [vmem:[%s1331_s6] sm:$0xff] %vm812_vm4, %v811_v31 }

</bundles_post_ra>
